<compile_context>
chip_gen: v6e
topology: v6e:2x2x1
jax: 0.10.0
libtpu: 0.0.40
codegen_flags: <defaults>
</compile_context>

<pallas_src>
import jax
import jax.numpy as jnp
from jax import lax
from jax.experimental import pallas as pl
from jax.experimental.pallas import tpu as pltpu


def _round_up(x, m):
    return (x + m - 1) // m * m


def _neg_nll_kernel(x_ref, t_ref, wt_ref, o_ref):
    """Per-row weighted target gather, accumulated over the class (j) axis.

    x_ref : (TN, TC) log-probs block (any float dtype; upcast to f32 here)
    t_ref : (TN, 1)  int32 global target class per row
    wt_ref: (TN, 1)  f32 per-row weight = class_weights[target]
    o_ref : (TN, 1)  f32 per-row partial  w_t[n] * x[n, t_n]   (resident over j)
    """
    j = pl.program_id(1)

    @pl.when(j == 0)
    def _():
        o_ref[...] = jnp.zeros_like(o_ref)

    x = x_ref[...].astype(jnp.float32)            # upcast in-kernel (bf16-in-HBM ok)
    t = t_ref[...]                                # (TN, 1)
    wt = wt_ref[...]                              # (TN, 1)
    tn, tc = x.shape

    cols = j * tc + lax.broadcasted_iota(jnp.int32, (tn, tc), 1)
    mask = cols == t                              # one-hot of target within this block
    picked = jnp.sum(jnp.where(mask, x, 0.0), axis=1, keepdims=True)   # (TN, 1)
    o_ref[...] += wt * picked


def _weighted_nll_pallas(x, target, class_weights, *, max_tile_n=512, max_tile_c=2048):
    """Weighted-mean NLL loss: -(sum_n w[t_n] * x[n, t_n]) / (sum_n w[t_n])."""
    n, c = x.shape
    target = target.astype(jnp.int32)

    # O(N) gather + denominator in JAX glue (kernel only streams x).
    w_t = class_weights.astype(jnp.float32)[target]          # (N,)
    den = jnp.sum(w_t)
    # TODO(synk): no ignore_index / out-of-range-target error like torch nll_loss;
    # such rows silently contribute 0 (same behavior as the original kernel).

    # ---- tile / pad selection (respect the (8, 128) block rule) ----------
    assert max_tile_n % 8 == 0 and max_tile_c % 128 == 0
    tn = _round_up(n, 8) if n <= max_tile_n else max_tile_n
    n_pad = _round_up(n, tn)
    if c <= 128:
        tc, c_pad = c, c                 # full-extent lane dim is always legal
    else:
        c_pad = _round_up(c, 128)
        tc = min(max_tile_c, c_pad)      # multiple of 128
        c_pad = _round_up(c_pad, tc)

    if n_pad != n or c_pad != c:
        x_p = jnp.pad(x, ((0, n_pad - n), (0, c_pad - c)))
    else:
        x_p = x
    t_p = jnp.pad(target, (0, n_pad - n), constant_values=-1).reshape(n_pad, 1)
    wt_p = jnp.pad(w_t, (0, n_pad - n)).reshape(n_pad, 1)

    grid = (n_pad // tn, c_pad // tc)

    per_row = pl.pallas_call(
        _neg_nll_kernel,
        out_shape=jax.ShapeDtypeStruct((n_pad, 1), jnp.float32),
        grid=grid,
        in_specs=[
            pl.BlockSpec((tn, tc), lambda i, j: (i, j)),
            pl.BlockSpec((tn, 1), lambda i, j: (i, 0)),
            pl.BlockSpec((tn, 1), lambda i, j: (i, 0)),
        ],
        out_specs=pl.BlockSpec((tn, 1), lambda i, j: (i, 0)),
        compiler_params=pltpu.CompilerParams(
            dimension_semantics=("parallel", "arbitrary")),
    )(x_p, t_p, wt_p)

    num = jnp.sum(per_row)               # padded rows contribute exactly 0
    return -(num / den)


class NEGLossPallas:
    """JAX/Pallas port of NEGLoss."""

    def __init__(self, word_freqs, num_negative_samples=5):
        self.num_negative_samples = num_negative_samples
        self.num_words = word_freqs.shape[0]
        pow_freqs = jnp.power(word_freqs.astype(jnp.float32), 0.75)
        # F.normalize(..., dim=0) is L2 normalization; only relative magnitudes
        # matter for the categorical sampling below.
        self.distr = pow_freqs / jnp.sqrt(jnp.sum(pow_freqs * pow_freqs))

    def sample(self, num_samples, positives, key):
        # +1 for each occurrence of a positive class.
        weights = jnp.zeros((self.num_words,), jnp.float32).at[positives].add(1.0)
        # Rejection sampling of negatives (reject w in positives) is equivalent
        # to sampling from the distribution with positive classes masked out.
        logits = jnp.where(weights > 0, -jnp.inf, jnp.log(self.distr))
        neg = jax.random.categorical(key, logits, shape=(num_samples,))
        weights = weights.at[neg].add(1.0)
        return weights

    def forward(self, input_logp, target, key):
        class_weights = self.sample(
            self.num_negative_samples, positives=target, key=key
        )
        return _weighted_nll_pallas(input_logp, target, class_weights)


def _reference_nll_loss(x, target, class_weights):
    # PyTorch nll_loss(input, target, weight, reduction='mean')
    picked = x[jnp.arange(x.shape[0]), target]
    w_t = class_weights[target]
    return -jnp.sum(w_t * picked) / jnp.sum(w_t)


if __name__ == "__main__":
    key = jax.random.PRNGKey(0)
    (k_logits, k_target, k_freqs, k_sample,
     k2_logits, k2_target) = jax.random.split(key, 6)

    # --- small shapes matching the module (word2vec-style) ----------------
    N, C, K_NEG = 8, 32, 5

    # Deterministic synthetic "word frequencies" (stand-in for word_freqs dict).
    word_freqs = jnp.arange(1, C + 1, dtype=jnp.float32) + jax.random.uniform(
        k_freqs, (C,), minval=0.0, maxval=0.5)

    log_probs = jax.nn.log_softmax(
        jax.random.normal(k_logits, (N, C), dtype=jnp.float32), axis=-1)
    target = jax.random.randint(k_target, (N,), 0, C, dtype=jnp.int32)

    loss_mod = NEGLossPallas(word_freqs, num_negative_samples=K_NEG)
    loss = jax.block_until_ready(loss_mod.forward(log_probs, target, k_sample))

    cw = loss_mod.sample(K_NEG, target, k_sample)
    ref = _reference_nll_loss(log_probs, target, cw)
    assert jnp.allclose(loss, ref, rtol=1e-5, atol=1e-5), (loss, ref)

    # --- exercise the tiled / padded multi-block grid path (bf16 input) ----
    N2, C2 = 24, 300
    log_probs2 = jax.nn.log_softmax(
        jax.random.normal(k2_logits, (N2, C2), dtype=jnp.float32), axis=-1
    ).astype(jnp.bfloat16)
    target2 = jax.random.randint(k2_target, (N2,), 0, C2, dtype=jnp.int32)
    cw2 = jnp.zeros((C2,), jnp.float32).at[target2].add(1.0) + 0.5
    got2 = jax.block_until_ready(
        _weighted_nll_pallas(log_probs2, target2, cw2,
                             max_tile_n=8, max_tile_c=128))
    ref2 = _reference_nll_loss(log_probs2.astype(jnp.float32), target2, cw2)
    assert jnp.allclose(got2, ref2, rtol=1e-3, atol=1e-3), (got2, ref2)

    print("KERNEL_OK")
</pallas_src>

<mosaic_0001>
module attributes {stable_mosaic.version = 11 : i64} {
  func.func @_neg_nll_kernel(%arg0: i32, %arg1: i32, %arg2: memref<8x32xf32, #tpu.memory_space<vmem>>, %arg3: memref<8x1xi32, #tpu.memory_space<vmem>>, %arg4: memref<8x1xf32, #tpu.memory_space<vmem>>, %arg5: memref<8x1xf32, #tpu.memory_space<vmem>>) attributes {dimension_semantics = [#tpu.dimension_semantics<parallel>, #tpu.dimension_semantics<arbitrary>], iteration_bounds = array<i64: 1, 1>, scalar_prefetch = 0 : i64, scratch_operands = 0 : i64, tpu.core_type = #tpu.core_type<tc>, window_params = [{transform_indices = @transform_0, window_bounds = array<i64: 8, 32>}, {transform_indices = @transform_1, window_bounds = array<i64: 8, 1>}, {transform_indices = @transform_2, window_bounds = array<i64: 8, 1>}, {transform_indices = @transform_3, window_bounds = array<i64: 8, 1>}]} {
    %c0_i32 = arith.constant 0 : i32
    %0 = arith.cmpi eq, %arg1, %c0_i32 : i32
    %1 = arith.extui %0 : i1 to i32
    %c0_i32_0 = arith.constant 0 : i32
    %2 = arith.cmpi ne, %1, %c0_i32_0 : i32
    scf.if %2 {
      %cst_11 = arith.constant 0.000000e+00 : f32
      %20 = vector.broadcast %cst_11 : f32 to vector<8x1xf32>
      %c0_12 = arith.constant 0 : index
      %c0_13 = arith.constant 0 : index
      %21 = vector.load %arg5[%c0_12, %c0_13] : memref<8x1xf32, #tpu.memory_space<vmem>>, vector<8x1xf32>
      tpu.vector_store %arg5[%c0_12, %c0_13], %20 {strides = array<i32>} : memref<8x1xf32, #tpu.memory_space<vmem>>, vector<8x1xf32>,
    } else {
    }
    %c0 = arith.constant 0 : index
    %c0_1 = arith.constant 0 : index
    %3 = vector.load %arg2[%c0, %c0_1] : memref<8x32xf32, #tpu.memory_space<vmem>>, vector<8x32xf32>
    %c0_2 = arith.constant 0 : index
    %c0_3 = arith.constant 0 : index
    %4 = vector.load %arg3[%c0_2, %c0_3] : memref<8x1xi32, #tpu.memory_space<vmem>>, vector<8x1xi32>
    %c0_4 = arith.constant 0 : index
    %c0_5 = arith.constant 0 : index
    %5 = vector.load %arg4[%c0_4, %c0_5] : memref<8x1xf32, #tpu.memory_space<vmem>>, vector<8x1xf32>
    %c32_i32 = arith.constant 32 : i32
    %6 = arith.muli %arg1, %c32_i32 : i32
    %7 = tpu.iota {dimensions = array<i32: 1>} : vector<8x32xi32>
    %8 = vector.broadcast %6 : i32 to vector<8x32xi32>
    %9 = arith.addi %8, %7 : vector<8x32xi32>
    %10 = vector.broadcast %4 : vector<8x1xi32> to vector<8x32xi32>
    %11 = arith.cmpi eq, %9, %10 : vector<8x32xi32>
    %cst = arith.constant 0.000000e+00 : f32
    %12 = vector.broadcast %cst : f32 to vector<8x32xf32>
    %13 = arith.select %11, %3, %12 : vector<8x32xi1>, vector<8x32xf32>
    %cst_6 = arith.constant dense<0.000000e+00> : vector<8xf32>
    %14 = vector.multi_reduction <add>, %13, %cst_6 [1] : vector<8x32xf32> to vector<8xf32>
    %15 = vector.shape_cast %14 : vector<8xf32> to vector<8x1xf32>
    %c0_7 = arith.constant 0 : index
    %c0_8 = arith.constant 0 : index
    %16 = vector.load %arg5[%c0_7, %c0_8] : memref<8x1xf32, #tpu.memory_space<vmem>>, vector<8x1xf32>
    %17 = arith.mulf %5, %15 : vector<8x1xf32>
    %18 = arith.addf %16, %17 : vector<8x1xf32>
    %c0_9 = arith.constant 0 : index
    %c0_10 = arith.constant 0 : index
    %19 = vector.load %arg5[%c0_9, %c0_10] : memref<8x1xf32, #tpu.memory_space<vmem>>, vector<8x1xf32>
    tpu.vector_store %arg5[%c0_9, %c0_10], %18 {strides = array<i32>} : memref<8x1xf32, #tpu.memory_space<vmem>>, vector<8x1xf32>,
    return
  }
  func.func @transform_0(%arg0: i32, %arg1: i32) -> (i32, i32) {
    %c0_i32 = arith.constant 0 : i32
    return %arg0, %arg1 : i32, i32
  }
  func.func @transform_1(%arg0: i32, %arg1: i32) -> (i32, i32) {
    %c0_i32 = arith.constant 0 : i32
    %c0_i32_0 = arith.constant 0 : i32
    return %arg0, %c0_i32 : i32, i32
  }
  func.func @transform_2(%arg0: i32, %arg1: i32) -> (i32, i32) {
    %c0_i32 = arith.constant 0 : i32
    %c0_i32_0 = arith.constant 0 : i32
    return %arg0, %c0_i32 : i32, i32
  }
  func.func @transform_3(%arg0: i32, %arg1: i32) -> (i32, i32) {
    %c0_i32 = arith.constant 0 : i32
    %c0_i32_0 = arith.constant 0 : i32
    return %arg0, %c0_i32 : i32, i32
  }
}

</mosaic_0001>

<bundles_post_ra>
// kernel: tpu_custom_call.1
= control target key start
LH: loop header
LB: loop body
LE: loop exit
PB: predicated region body
PF: predicated region fallthrough
CT: control target
= control target key end

     0   :  { %v49_v0 = vmov 0   ;;  %vm18_vm0 = vcmask 7168   ;;  %v50_v2 = vmov 0.0   ;;  %v24_v3 = vlaneseq  ;;  %s91_s1 = inlined_call_operand.vmem [shape: s32[8,1], index: 1, kind: input, shape index: {}]   ;;  %s92_s3 = inlined_call_operand.vmem [shape: f32[8,1], index: 3, kind: output, shape index: {}]   ;;  %s93_s0 = inlined_call_operand.vmem [shape: f32[8,32], index: 0, kind: input, shape index: {}]   ;;  %s94_s2 = inlined_call_operand.vmem [shape: f32[8,1], index: 2, kind: input, shape index: {}]  }
   0x1   :  { %48 = vset.pattern.permute.xlu0 %v49_v0  ;;  %v21_v1 = vld [vmem:[%s91_s1] sm:$0xff]  ;;  %19 = vst.msk [vmem:[%s92_s3] sm:$0xff] %vm18_vm0, %v50_v2  ;;  %vm33_vm1 = vcmask 261120  }
   0x2   :  { %29 = vperm.xlu0 %48, %v21_v1   ;;  %v25_v4 = vand.u32 127, %v24_v3  ;;  %v20_v5 = vld [vmem:[%s93_s0] sm:$0xff] }
   0x3   :  { %v22_v9 = vld [vmem:[%s94_s2] sm:$0xff] }
   0x8   :  { %v37_v10 = vld [vmem:[%s92_s3] sm:$0xff] }
  0x7d   :  { %v30_v6 = vpop.permute.xlu0 %29 }
  0x7e   :  { %vm31_vm2 = vcmp.eq.s32.totalorder %v25_v4, %v30_v6 }
  0x7f   :  { %v32_v7 = vsel %vm31_vm2, %v20_v5, 0.0 }
  0x80   :  { %v34_v8 = vsel %vm33_vm1, %v32_v7, 0.0 }
  0x81   :  { %35 = vadd.xlane.f32.xlu0 %v34_v8 }
 0x10a   :  { %v36_v11 = vpop.xlane.xlu0 %35 }
 0x10b   :  { %v38_v12 = vmul.f32 %v36_v11, %v22_v9 }
 0x10d   :  { %v39_v13 = vadd.f32 %v38_v12, %v37_v10 }
 0x10f   :  { %41 = vst.msk [vmem:[%s92_s3] sm:$0xff] %vm18_vm0, %v39_v13 }

</bundles_post_ra>
